<compile_context>
chip_gen: v7x
topology: tpu7x:2x2x1
jax: 0.10.0
libtpu: 0.0.40
codegen_flags: <defaults>
</compile_context>

<pallas_src>
import functools

import jax
import jax.numpy as jnp
from jax import lax
from jax.experimental import pallas as pl
from jax.experimental.pallas import tpu as pltpu

_LANE = 128
_MAX_BLOCK_ROWS = 512            # 512 x 128 x 4 B = 256 KiB per f32 tile
_CACHE_BUDGET_BYTES = 24 << 20   # diff-cache budget; safe on v5e/v6e (128 MiB) and v7x (64 MiB)


# ----------------------------------------------------------------------------
# Fast path: whole |t - p| slab cached in VMEM, single-pass grid.
# ----------------------------------------------------------------------------
def _berhu_cached_kernel(t_ref, p_ref, out_ref, acc_ref, cache_ref, *,
                         threshold, n_tiles):
    i = pl.program_id(0)

    @pl.when(i == 0)
    def _():
        acc_ref[...] = jnp.zeros_like(acc_ref)
        out_ref[...] = jnp.zeros_like(out_ref)

    # Elementwise running max of |t - p|; cache diff so the second pass never
    # touches HBM again.
    diff = jnp.abs(t_ref[...].astype(jnp.float32)
                   - p_ref[...].astype(jnp.float32))
    cache_ref[i] = diff
    acc_ref[...] = jnp.maximum(acc_ref[...], diff)

    @pl.when(i == n_tiles - 1)
    def _():
        delta = threshold * jnp.max(acc_ref[...])
        delta2 = delta * delta
        two_delta2 = 2.0 * delta2
        inv_2delta = 1.0 / (2.0 * delta)

        # Reuse the max accumulator as the BerHu sum accumulator.
        acc_ref[...] = jnp.zeros_like(acc_ref)

        def body(j, carry):
            d = cache_ref[j]
            # part1 = -F.threshold(-diff, -delta, 0): diff where diff < delta
            part1 = jnp.where(d < delta, d, 0.0)
            # part2 = F.threshold(diff^2 + delta^2, 2*delta^2, 0) / (2*delta)
            sq = d * d + delta2
            part2 = jnp.where(sq > two_delta2, sq, 0.0) * inv_2delta
            acc_ref[...] = acc_ref[...] + (part1 + part2)
            return carry

        lax.fori_loop(0, n_tiles, body, jnp.int32(0))
        out_ref[...] = jnp.sum(acc_ref[...], keepdims=True)


# ----------------------------------------------------------------------------
# Streaming path: inputs are read twice from HBM (two-phase grid).
# ----------------------------------------------------------------------------
def _berhu_streaming_kernel(t_ref, p_ref, out_ref, acc_ref, sc_sm, *, threshold):
    phase = pl.program_id(0)
    i = pl.program_id(1)
    last = pl.num_programs(1) - 1

    @pl.when(jnp.logical_and(phase == 0, i == 0))
    def _():
        acc_ref[...] = jnp.zeros_like(acc_ref)
        out_ref[...] = jnp.zeros_like(out_ref)

    # phase 0: elementwise running max of |t - p| (VPU only).
    @pl.when(phase == 0)
    def _():
        diff = jnp.abs(t_ref[...].astype(jnp.float32)
                       - p_ref[...].astype(jnp.float32))
        acc_ref[...] = jnp.maximum(acc_ref[...], diff)

    # phase 1, first tile: one cross-lane reduce -> delta + derived scalars,
    # then reset the accumulator for the sum pass.
    @pl.when(jnp.logical_and(phase == 1, i == 0))
    def _():
        delta = threshold * jnp.max(acc_ref[...])
        sc_sm[0] = delta
        sc_sm[1] = delta * delta
        sc_sm[2] = 2.0 * delta * delta
        sc_sm[3] = 1.0 / (2.0 * delta)
        acc_ref[...] = jnp.zeros_like(acc_ref)

    # phase 1: elementwise BerHu partials into the (reused) accumulator.
    @pl.when(phase == 1)
    def _():
        delta = sc_sm[0]
        delta2 = sc_sm[1]
        two_delta2 = sc_sm[2]
        inv_2delta = sc_sm[3]
        diff = jnp.abs(t_ref[...].astype(jnp.float32)
                       - p_ref[...].astype(jnp.float32))
        part1 = jnp.where(diff < delta, diff, 0.0)
        sq = diff * diff + delta2
        part2 = jnp.where(sq > two_delta2, sq, 0.0) * inv_2delta
        acc_ref[...] = acc_ref[...] + (part1 + part2)

    # phase 1, last tile: single final reduce.
    @pl.when(jnp.logical_and(phase == 1, i == last))
    def _():
        out_ref[...] = jnp.sum(acc_ref[...], keepdims=True)


def _as_lane_slab(x, rows):
    """Flatten to 1-D, zero-pad only if needed, view as a (rows, 128) slab."""
    flat = jnp.ravel(x)
    pad = rows * _LANE - flat.shape[0]
    if pad:
        flat = jnp.pad(flat, (0, pad))
    return flat.reshape(rows, _LANE)


def berhu_loss(target, pred, mask=None, d_map=None, threshold=0.2,
               _force_streaming=False):
    """Pallas implementation of BerhuLoss.forward (mask / d_map unused, as in the reference)."""
    assert target.ndim == pred.ndim, "inconsistent dimensions"
    assert target.shape == pred.shape

    n = 1
    for d in target.shape:
        n *= d

    t_bytes = jnp.dtype(target.dtype).itemsize
    p_bytes = jnp.dtype(pred.dtype).itemsize
    itemsize = min(t_bytes, p_bytes)
    sublane = max(8, 32 // max(int(itemsize), 1))   # 8 (f32), 16 (bf16/f16), 32 (8-bit)

    rows_needed = pl.cdiv(n, _LANE)
    if rows_needed >= _MAX_BLOCK_ROWS:
        block_rows = _MAX_BLOCK_ROWS
    else:
        block_rows = pl.cdiv(rows_needed, sublane) * sublane
    rows = pl.cdiv(rows_needed, block_rows) * block_rows
    n_tiles = rows // block_rows

    t2d = _as_lane_slab(target, rows)
    p2d = _as_lane_slab(pred, rows)

    tile_elems = block_rows * _LANE
    cache_bytes = rows * _LANE * 4
    in_buf_bytes = 2 * tile_elems * (t_bytes + p_bytes)   # double-buffered inputs
    acc_bytes = tile_elems * 4

    use_cache = (cache_bytes <= _CACHE_BUDGET_BYTES) and not _force_streaming

    if use_cache:
        grid = (n_tiles,)
        kernel = functools.partial(_berhu_cached_kernel,
                                   threshold=float(threshold), n_tiles=n_tiles)
        in_specs = [pl.BlockSpec((block_rows, _LANE), lambda i: (i, 0))] * 2
        out_specs = pl.BlockSpec((1, 1), lambda i: (0, 0))
        scratch = [
            pltpu.VMEM((block_rows, _LANE), jnp.float32),          # max / sum acc
            pltpu.VMEM((n_tiles, block_rows, _LANE), jnp.float32), # diff cache
        ]
        dim_sem = ("arbitrary",)
        vmem_limit = in_buf_bytes + acc_bytes + cache_bytes + (4 << 20)
    else:
        grid = (2, n_tiles)   # (phase, tile) — sequential; phase 0 before phase 1
        kernel = functools.partial(_berhu_streaming_kernel,
                                   threshold=float(threshold))
        in_specs = [pl.BlockSpec((block_rows, _LANE), lambda ph, i: (i, 0))] * 2
        out_specs = pl.BlockSpec((1, 1), lambda ph, i: (0, 0))
        scratch = [
            pltpu.VMEM((block_rows, _LANE), jnp.float32),   # max / sum acc (reused)
            pltpu.SMEM((4,), jnp.float32),                  # delta, delta^2, 2*delta^2, 1/(2*delta)
        ]
        dim_sem = ("arbitrary", "arbitrary")
        vmem_limit = in_buf_bytes + acc_bytes + (4 << 20)

    total = pl.pallas_call(
        kernel,
        out_shape=jax.ShapeDtypeStruct((1, 1), jnp.float32),
        grid_spec=pltpu.PrefetchScalarGridSpec(
            num_scalar_prefetch=0,
            grid=grid,
            in_specs=in_specs,
            out_specs=out_specs,
            scratch_shapes=scratch,
        ),
        compiler_params=pltpu.CompilerParams(
            dimension_semantics=dim_sem,
            vmem_limit_bytes=int(vmem_limit),
        ),
    )(t2d, p2d)

    # loss = diff.mean() over the true (unpadded) element count.
    return (total[0, 0] / jnp.float32(n)).astype(jnp.float32)


def berhu_loss_ref(target, pred, threshold=0.2):
    """Pure-JAX reference mirroring the PyTorch forward."""
    diff = jnp.abs(target.astype(jnp.float32) - pred.astype(jnp.float32))
    delta = threshold * jnp.max(diff)
    part1 = jnp.where(diff < delta, diff, 0.0)
    sq = diff * diff + delta * delta
    part2 = jnp.where(sq > 2.0 * delta * delta, sq, 0.0) / (2.0 * delta)
    return jnp.mean(part1 + part2)


if __name__ == "__main__":
    key = jax.random.PRNGKey(0)
    k1, k2, k3, k4 = jax.random.split(key, 4)

    # Case 1: small NCHW depth-map-like input (single tile, cached path).
    t1 = jax.random.uniform(k1, (2, 4, 16, 16), dtype=jnp.float32) * 5.0
    p1 = t1 + 0.3 * jax.random.normal(k2, (2, 4, 16, 16), dtype=jnp.float32)
    out1 = jax.block_until_ready(berhu_loss(t1, p1, threshold=0.2))
    ref1 = jax.block_until_ready(berhu_loss_ref(t1, p1, threshold=0.2))
    assert jnp.isfinite(out1), f"non-finite loss: {out1}"
    assert jnp.allclose(out1, ref1, rtol=1e-5, atol=1e-6), f"mismatch: {out1} vs {ref1}"

    # Case 2: larger input exercising the multi-tile + VMEM diff-cache path.
    t2 = jax.random.uniform(k3, (2, 4, 64, 256), dtype=jnp.float32) * 5.0
    p2 = t2 + 0.3 * jax.random.normal(k4, (2, 4, 64, 256), dtype=jnp.float32)
    out2 = jax.block_until_ready(berhu_loss(t2, p2, threshold=0.2))
    ref2 = jax.block_until_ready(berhu_loss_ref(t2, p2, threshold=0.2))
    assert jnp.isfinite(out2), f"non-finite loss: {out2}"
    assert jnp.allclose(out2, ref2, rtol=1e-4, atol=1e-6), f"mismatch: {out2} vs {ref2}"

    # Case 3: same data, forcing the two-phase streaming (no-cache) path.
    out3 = jax.block_until_ready(
        berhu_loss(t2, p2, threshold=0.2, _force_streaming=True))
    assert jnp.isfinite(out3), f"non-finite loss: {out3}"
    assert jnp.allclose(out3, ref2, rtol=1e-4, atol=1e-6), f"mismatch: {out3} vs {ref2}"

    print("KERNEL_OK")
</pallas_src>

<mosaic_0001>
module attributes {stable_mosaic.version = 11 : i64} {
  func.func @_berhu_cached_kernel(%arg0: i32, %arg1: memref<16x128xf32, #tpu.memory_space<vmem>>, %arg2: memref<16x128xf32, #tpu.memory_space<vmem>>, %arg3: memref<1x1xf32, #tpu.memory_space<vmem>>, %arg4: memref<16x128xf32, #tpu.memory_space<vmem>>, %arg5: memref<1x16x128xf32, #tpu.memory_space<vmem>>) attributes {dimension_semantics = [#tpu.dimension_semantics<arbitrary>], iteration_bounds = array<i64: 1>, scalar_prefetch = 0 : i64, scratch_operands = 2 : i64, tpu.core_type = #tpu.core_type<tc>, window_params = [{transform_indices = @transform_0, window_bounds = array<i64: 16, 128>}, {transform_indices = @transform_1, window_bounds = array<i64: 16, 128>}, {pipeline_mode = #tpu.pipeline_mode<synchronous>, transform_indices = @transform_2, window_bounds = array<i64: 1, 1>}]} {
    %c0_i32 = arith.constant 0 : i32
    %0 = arith.cmpi eq, %arg0, %c0_i32 : i32
    %1 = arith.extui %0 : i1 to i32
    %c0_i32_0 = arith.constant 0 : i32
    %2 = arith.cmpi ne, %1, %c0_i32_0 : i32
    scf.if %2 {
      %cst = arith.constant 0.000000e+00 : f32
      %17 = vector.broadcast %cst : f32 to vector<16x128xf32>
      %c0_12 = arith.constant 0 : index
      %c0_13 = arith.constant 0 : index
      %18 = vector.load %arg4[%c0_12, %c0_13] : memref<16x128xf32, #tpu.memory_space<vmem>>, vector<16x128xf32>
      tpu.vector_store %arg4[%c0_12, %c0_13], %17 {strides = array<i32>} : memref<16x128xf32, #tpu.memory_space<vmem>>, vector<16x128xf32>,
      %cst_14 = arith.constant 0.000000e+00 : f32
      %19 = vector.broadcast %cst_14 : f32 to vector<1x1xf32>
      %c0_15 = arith.constant 0 : index
      %c0_16 = arith.constant 0 : index
      %20 = vector.load %arg3[%c0_15, %c0_16] : memref<1x1xf32, #tpu.memory_space<vmem>>, vector<1x1xf32>
      tpu.vector_store %arg3[%c0_15, %c0_16], %19 {strides = array<i32>} : memref<1x1xf32, #tpu.memory_space<vmem>>, vector<1x1xf32>,
    } else {
    }
    %c0 = arith.constant 0 : index
    %c0_1 = arith.constant 0 : index
    %3 = vector.load %arg1[%c0, %c0_1] : memref<16x128xf32, #tpu.memory_space<vmem>>, vector<16x128xf32>
    %c0_2 = arith.constant 0 : index
    %c0_3 = arith.constant 0 : index
    %4 = vector.load %arg2[%c0_2, %c0_3] : memref<16x128xf32, #tpu.memory_space<vmem>>, vector<16x128xf32>
    %5 = arith.subf %3, %4 : vector<16x128xf32>
    %6 = math.absf %5 : vector<16x128xf32>
    %7 = arith.index_cast %arg0 : i32 to index
    %c0_4 = arith.constant 0 : index
    %c0_5 = arith.constant 0 : index
    %8 = vector.load %arg5[%7, %c0_4, %c0_5] : memref<1x16x128xf32, #tpu.memory_space<vmem>>, vector<1x16x128xf32>
    %9 = vector.shape_cast %8 : vector<1x16x128xf32> to vector<16x128xf32>
    %10 = vector.shape_cast %6 : vector<16x128xf32> to vector<1x16x128xf32>
    tpu.vector_store %arg5[%7, %c0_4, %c0_5], %10 {strides = array<i32>} : memref<1x16x128xf32, #tpu.memory_space<vmem>>, vector<1x16x128xf32>,
    %c0_6 = arith.constant 0 : index
    %c0_7 = arith.constant 0 : index
    %11 = vector.load %arg4[%c0_6, %c0_7] : memref<16x128xf32, #tpu.memory_space<vmem>>, vector<16x128xf32>
    %12 = arith.maximumf %11, %6 : vector<16x128xf32>
    %c0_8 = arith.constant 0 : index
    %c0_9 = arith.constant 0 : index
    %13 = vector.load %arg4[%c0_8, %c0_9] : memref<16x128xf32, #tpu.memory_space<vmem>>, vector<16x128xf32>
    tpu.vector_store %arg4[%c0_8, %c0_9], %12 {strides = array<i32>} : memref<16x128xf32, #tpu.memory_space<vmem>>, vector<16x128xf32>,
    %c0_i32_10 = arith.constant 0 : i32
    %14 = arith.cmpi eq, %arg0, %c0_i32_10 : i32
    %15 = arith.extui %14 : i1 to i32
    %c0_i32_11 = arith.constant 0 : i32
    %16 = arith.cmpi ne, %15, %c0_i32_11 : i32
    scf.if %16 {
      %c0_12 = arith.constant 0 : index
      %c0_13 = arith.constant 0 : index
      %17 = vector.load %arg4[%c0_12, %c0_13] : memref<16x128xf32, #tpu.memory_space<vmem>>, vector<16x128xf32>
      %18 = vector.shape_cast %17 : vector<16x128xf32> to vector<1x16x128xf32>
      %cst = arith.constant dense<0xFF800000> : vector<1xf32>
      %19 = vector.multi_reduction <maximumf>, %18, %cst [1, 2] : vector<1x16x128xf32> to vector<1xf32>
      %20 = vector.shape_cast %19 : vector<1xf32> to vector<1x1x1xf32>
      %21 = vector.extract %20[0, 0, 0] : f32 from vector<1x1x1xf32>
      %cst_14 = arith.constant 2.000000e-01 : f32
      %22 = arith.mulf %cst_14, %21 : f32
      %23 = arith.mulf %22, %22 : f32
      %cst_15 = arith.constant 2.000000e+00 : f32
      %24 = arith.mulf %cst_15, %23 : f32
      %cst_16 = arith.constant 2.000000e+00 : f32
      %25 = arith.mulf %cst_16, %22 : f32
      %cst_17 = arith.constant 1.000000e+00 : f32
      %26 = arith.divf %cst_17, %25 : f32
      %cst_18 = arith.constant 0.000000e+00 : f32
      %27 = vector.broadcast %cst_18 : f32 to vector<16x128xf32>
      %c0_19 = arith.constant 0 : index
      %c0_20 = arith.constant 0 : index
      %28 = vector.load %arg4[%c0_19, %c0_20] : memref<16x128xf32, #tpu.memory_space<vmem>>, vector<16x128xf32>
      tpu.vector_store %arg4[%c0_19, %c0_20], %27 {strides = array<i32>} : memref<16x128xf32, #tpu.memory_space<vmem>>, vector<16x128xf32>,
      %c0_i32_21 = arith.constant 0 : i32
      %29 = arith.index_cast %c0_i32_21 : i32 to index
      %c0_22 = arith.constant 0 : index
      %c0_23 = arith.constant 0 : index
      %30 = vector.load %arg5[%29, %c0_22, %c0_23] : memref<1x16x128xf32, #tpu.memory_space<vmem>>, vector<1x16x128xf32>
      %31 = vector.shape_cast %30 : vector<1x16x128xf32> to vector<16x128xf32>
      %32 = vector.broadcast %22 : f32 to vector<16x128xf32>
      %33 = arith.cmpf olt, %31, %32 : vector<16x128xf32>
      %cst_24 = arith.constant 0.000000e+00 : f32
      %34 = vector.broadcast %cst_24 : f32 to vector<16x128xf32>
      %35 = arith.select %33, %31, %34 : vector<16x128xi1>, vector<16x128xf32>
      %36 = arith.mulf %31, %31 : vector<16x128xf32>
      %37 = vector.broadcast %23 : f32 to vector<16x128xf32>
      %38 = arith.addf %36, %37 : vector<16x128xf32>
      %39 = vector.broadcast %24 : f32 to vector<16x128xf32>
      %40 = arith.cmpf ogt, %38, %39 : vector<16x128xf32>
      %cst_25 = arith.constant 0.000000e+00 : f32
      %41 = vector.broadcast %cst_25 : f32 to vector<16x128xf32>
      %42 = arith.select %40, %38, %41 : vector<16x128xi1>, vector<16x128xf32>
      %43 = vector.broadcast %26 : f32 to vector<16x128xf32>
      %44 = arith.mulf %42, %43 : vector<16x128xf32>
      %c0_26 = arith.constant 0 : index
      %c0_27 = arith.constant 0 : index
      %45 = vector.load %arg4[%c0_26, %c0_27] : memref<16x128xf32, #tpu.memory_space<vmem>>, vector<16x128xf32>
      %46 = arith.addf %35, %44 : vector<16x128xf32>
      %47 = arith.addf %45, %46 : vector<16x128xf32>
      %c0_28 = arith.constant 0 : index
      %c0_29 = arith.constant 0 : index
      %48 = vector.load %arg4[%c0_28, %c0_29] : memref<16x128xf32, #tpu.memory_space<vmem>>, vector<16x128xf32>
      tpu.vector_store %arg4[%c0_28, %c0_29], %47 {strides = array<i32>} : memref<16x128xf32, #tpu.memory_space<vmem>>, vector<16x128xf32>,
      %c1_i32 = arith.constant 1 : i32
      %c0_30 = arith.constant 0 : index
      %c0_31 = arith.constant 0 : index
      %49 = vector.load %arg4[%c0_30, %c0_31] : memref<16x128xf32, #tpu.memory_space<vmem>>, vector<16x128xf32>
      %50 = vector.shape_cast %49 : vector<16x128xf32> to vector<1x16x128xf32>
      %cst_32 = arith.constant dense<0.000000e+00> : vector<1xf32>
      %51 = vector.multi_reduction <add>, %50, %cst_32 [1, 2] : vector<1x16x128xf32> to vector<1xf32>
      %52 = vector.shape_cast %51 : vector<1xf32> to vector<1x1x1xf32>
      %53 = vector.extract %52[0, 0, 0] : f32 from vector<1x1x1xf32>
      %54 = vector.broadcast %53 : f32 to vector<1x1xf32>
      %c0_33 = arith.constant 0 : index
      %c0_34 = arith.constant 0 : index
      %55 = vector.load %arg3[%c0_33, %c0_34] : memref<1x1xf32, #tpu.memory_space<vmem>>, vector<1x1xf32>
      tpu.vector_store %arg3[%c0_33, %c0_34], %54 {strides = array<i32>} : memref<1x1xf32, #tpu.memory_space<vmem>>, vector<1x1xf32>,
    } else {
    }
    return
  }
  func.func @transform_0(%arg0: i32) -> (i32, i32) {
    %c0_i32 = arith.constant 0 : i32
    %c0_i32_0 = arith.constant 0 : i32
    return %arg0, %c0_i32 : i32, i32
  }
  func.func @transform_1(%arg0: i32) -> (i32, i32) {
    %c0_i32 = arith.constant 0 : i32
    %c0_i32_0 = arith.constant 0 : i32
    return %arg0, %c0_i32 : i32, i32
  }
  func.func @transform_2(%arg0: i32) -> (i32, i32) {
    %c0_i32 = arith.constant 0 : i32
    %c0_i32_0 = arith.constant 0 : i32
    %c0_i32_1 = arith.constant 0 : i32
    return %c0_i32, %c0_i32_0 : i32, i32
  }
}

</mosaic_0001>

<bundles_post_ra>
// kernel: tpu_custom_call.1
= control target key start
LH: loop header
LB: loop body
LE: loop exit
PB: predicated region body
PF: predicated region fallthrough
CT: control target
= control target key end

     0   :  { %7 = vsyncpa [#allocation5], 0  ;;  %s294_s0 = inlined_call_operand.hbm [shape: f32[16,128], index: 0, kind: input, shape index: {}]   ;;  %s295_s1 = inlined_call_operand.hbm [shape: f32[16,128], index: 1, kind: input, shape index: {}]   ;;  %s296_s2 = inlined_call_operand.hbm [shape: f32[1,1], index: 2, kind: output, shape index: {}]  }
   0x1   :  { %8 = vsyncpa [#allocation8], 0 }
   0x2   :  { %9 = vsyncpa [#allocation6], 0  ;;  %s235_s9 = smov [#allocation4]   ;;  %s163_s13 = scalar_lea.hbm %s294_s0, 256 }
   0x3   :  { %s15_s10 = sshll.u32 %s235_s9, 4  ;;  %p164_p0 = scmp.ne.s32.totalorder %s294_s0, %s163_s13  ;;  %s16_s10 = int_to_ptr.vmem [resolvable:$true] %s15_s10 }
   0x4   :  { %p167_p1 = scmp.lt.u32.totalorder %s163_s13, %s294_s0 }
   0x6   :  { %p169_p2 = pnand %p167_p1, %p164_p0 }
   0x8   :  { %172 = shalt.err (!%p169_p2)
}
   0x9   :  { %s173_s18 = scalar_lea.vmem %s16_s10, 256  ;;  %p178_p4 = scmp.lt.s32.totalorder %s16_s10, %s16_s10 }
   0xa   :  { %p174_p3 = scmp.ne.s32.totalorder %s16_s10, %s173_s18  ;;  %p179_p5 = scmp.lt.s32.totalorder %s173_s18, %s173_s18 }
   0xc   :  { %p180_p6 = por %p179_p5, %p178_p4 }
   0xe   :  { %p181_p7 = pnand %p180_p6, %p174_p3 }
  0x10   :  { %184 = shalt.err (!%p181_p7)
}
  0x11   :  { %s236_s19 = smov 128   ;;  %s237_s20 = smov 8  }
  0x12   :  { %21 = dma.hbm_to_vmem [thread:$0]  %s294_s0, 256, %s16_s10, [#allocation5], %s236_s19, %s236_s19, %s237_s20  }
  0x13   :  { %s238_s23 = smov [#allocation7]   ;;  %s185_s27 = scalar_lea.hbm %s295_s1, 256 }
  0x14   :  { %s27_s24 = sshll.u32 %s238_s23, 4  ;;  %p186_p8 = scmp.ne.s32.totalorder %s295_s1, %s185_s27  ;;  %s28_s24 = int_to_ptr.vmem [resolvable:$true] %s27_s24 }
  0x15   :  { %p189_p9 = scmp.lt.u32.totalorder %s185_s27, %s295_s1 }
  0x17   :  { %p191_p10 = pnand %p189_p9, %p186_p8 }
  0x19   :  { %194 = shalt.err (!%p191_p10)
}
  0x1a   :  { %s195_s4 = scalar_lea.vmem %s28_s24, 256  ;;  %p200_p12 = scmp.lt.s32.totalorder %s28_s24, %s28_s24 }
  0x1b   :  { %p196_p11 = scmp.ne.s32.totalorder %s28_s24, %s195_s4  ;;  %p201_p13 = scmp.lt.s32.totalorder %s195_s4, %s195_s4 }
  0x1d   :  { %p202_p0 = por %p201_p13, %p200_p12 }
  0x1f   :  { %p203_p1 = pnand %p202_p0, %p196_p11 }
  0x21   :  { %206 = shalt.err (!%p203_p1)
}
  0x22   :  { %33 = dma.hbm_to_vmem [thread:$0]  %s295_s1, 256, %s28_s24, [#allocation8], %s236_s19, %s236_s19, %s237_s20  }
  0x23   :  { %229 = dma.done.wait [#allocation5], 256  }
  0x24   :  { %230 = vsyncadd [#allocation5], 4294967040 }
  0x25   :  { %231 = dma.done.wait [#allocation8], 256  }
  0x26   :  { %232 = vsyncadd [#allocation8], 4294967040  ;;  %v48_v0 = vld [vmem:[#allocation4] sm:$0xff]  ;;  %v49_v1 = vld [vmem:[#allocation4 + $0x8] sm:$0xff]  ;;  %vm46_vm4 = vcmask 0   ;;  %v239_v37 = vmov 0.0  }
  0x27   :  { %v50_v2 = vld [vmem:[#allocation7] sm:$0xff]  ;;  %v51_v3 = vld [vmem:[#allocation7 + $0x8] sm:$0xff]  ;;  %47 = vst.msk [vmem:[#allocation9] sm:$0x1] %vm46_vm4, %v239_v37  ;;  %s240_s11 = smov [#allocation9]  }
  0x28   :  { %v52_v4 = vsub.f32 %v48_v0, %v50_v2  ;;  %v53_v5 = vsub.f32 %v49_v1, %v51_v3  ;;  %s139_s12 = sshll.u32 %s240_s11, 4  ;;  %s140_s12 = int_to_ptr.vmem [resolvable:$true] %s139_s12 }
  0x29   :  { %s207_s14 = scalar_lea.vmem %s140_s12, 16  ;;  %s211_s15 = scalar_lea.vmem %s140_s12, 32 }
  0x2a   :  { %v54_v6 = vand.u32 2147483647, %v52_v4  ;;  %v55_v7 = vand.u32 2147483647, %v53_v5  ;;  %p208_p2 = scmp.ne.s32.totalorder %s140_s12, %s207_s14  ;;  %p212_p3 = scmp.lt.s32.totalorder %s140_s12, %s140_s12 }
  0x2b   :  { %p213_p4 = scmp.lt.s32.totalorder %s211_s15, %s207_s14 }
  0x2c   :  { %v62_v8 = vmax.f32 %v54_v6, 0.0  ;;  %v63_v9 = vmax.f32 %v55_v7, 0.0  ;;  %v97_v20 = vmul.f32 %v54_v6, %v54_v6  ;;  %v98_v21 = vmul.f32 %v55_v7, %v55_v7 }
  0x2d   :  { %p214_p5 = por %p213_p4, %p212_p3 }
  0x2e   :  { %v71_v10 = vmax.f32 %v62_v8, %v63_v9 }
  0x2f   :  { %p215_p6 = pnand %p214_p5, %p208_p2 }
  0x30   :  { %72 = vmax.xlane.f32.xlu0 %v71_v10 }
  0xbd   :  { %v73_v11 = vpop.xlane.xlu0 %72 }
  0xbe   :  { %v74_v12 = vrot.slane %v73_v11, 4 }
  0xc0   :  { %v75_v13 = vmax.f32 %v73_v11, %v74_v12 }
  0xc2   :  { %v76_v14 = vrot.slane %v75_v13, 2 }
  0xc4   :  { %v77_v15 = vmax.f32 %v75_v13, %v76_v14 }
  0xc6   :  { %v78_v16 = vrot.slane %v77_v15, 1 }
  0xc8   :  { %v79_v17 = vmax.f32 %v77_v15, %v78_v16 }
  0xca   :  { %149 = vpush %v79_v17 }
  0xfb   :  { %s150_s1 = spop %149 }
  0xfc   :  { %s81_s6 = smul.f32 0.2, %s150_s1 }
  0xfe   :  { %s84_s7 = smul.f32 2.0, %s81_s6  ;;  %v92_v26 = vstv %s81_s6 }
  0xff   :  { %s82_s8 = smul.f32 %s81_s6, %s81_s6  ;;  %vm93_vm2 = vcmp.lt.f32.partialorder %v54_v6, %v92_v26  ;;  %vm94_vm3 = vcmp.lt.f32.partialorder %v55_v7, %v92_v26 }
 0x100   :  { %v85_v18 = vstv %s84_s7  ;;  %v95_v32 = vsel %vm93_vm2, %v54_v6, 0.0  ;;  %v96_v33 = vsel %vm94_vm3, %v55_v7, 0.0 }
 0x101   :  { %161 = vrcp.f32 %v85_v18  ;;  %s83_s9 = smul.f32 2.0, %s82_s8  ;;  %v99_v22 = vstv %s82_s8 }
 0x102   :  { %v100_v23 = vadd.f32 %v99_v22, %v97_v20  ;;  %v101_v24 = vadd.f32 %v99_v22, %v98_v21 }
 0x103   :  { %v102_v25 = vstv %s83_s9 }
 0x104   :  { %vm103_vm0 = vcmp.gt.f32.partialorder %v100_v23, %v102_v25  ;;  %vm104_vm1 = vcmp.gt.f32.partialorder %v101_v24, %v102_v25 }
 0x105   :  { %v105_v27 = vsel %vm103_vm0, %v100_v23, 0.0  ;;  %v106_v28 = vsel %vm104_vm1, %v101_v24, 0.0 }
 0x10b   :  { %v162_v19 = vpop.eup %161 }
 0x10c   :  { %151 = vpush %v162_v19 }
 0x13d   :  { %s152_s10 = spop %151 }
 0x13e   :  { %v107_v29 = vstv %s152_s10 }
 0x13f   :  { %v108_v30 = vmul.f32 %v107_v29, %v105_v27  ;;  %v109_v31 = vmul.f32 %v107_v29, %v106_v28 }
 0x141   :  { %v112_v34 = vadd.f32 %v108_v30, %v95_v32  ;;  %v113_v35 = vadd.f32 %v109_v31, %v96_v33 }
 0x143   :  { %v120_v36 = vadd.f32 %v113_v35, %v112_v34 }
 0x145   :  { %121 = vadd.xlane.f32.xlu0 %v120_v36 }
 0x1d2   :  { %v122_v38 = vpop.xlane.xlu0 %121 }
 0x1d3   :  { %v123_v39 = vrot.slane %v122_v38, 4 }
 0x1d5   :  { %v124_v40 = vadd.f32 %v123_v39, %v122_v38 }
 0x1d7   :  { %v125_v41 = vrot.slane %v124_v40, 2 }
 0x1d9   :  { %v126_v42 = vadd.f32 %v125_v41, %v124_v40 }
 0x1db   :  { %v127_v43 = vrot.slane %v126_v42, 1 }
 0x1dd   :  { %v128_v44 = vadd.f32 %v127_v43, %v126_v42 }
 0x1df   :  { %153 = vpush %v128_v44 }
 0x210   :  { %s154_s13 = spop %153 }
 0x211   :  { %v130_v45 = vstv %s154_s13 }
 0x212   :  { %132 = vst.msk [vmem:[#allocation9] sm:$0x1] %vm46_vm4, %v130_v45 }
 0x213   :  { %218 = shalt.err (!%p215_p6)
}
 0x214   :  { %s219_s18 = scalar_lea.hbm %s296_s2, 16 }
 0x215   :  { %p220_p7 = scmp.ne.s32.totalorder %s296_s2, %s219_s18  ;;  %p223_p8 = scmp.lt.u32.totalorder %s219_s18, %s296_s2 }
 0x217   :  { %p225_p9 = pnand %p223_p8, %p220_p7 }
 0x219   :  { %228 = shalt.err (!%p225_p9)
}
 0x21a   :  { %142 = dma.vmem_to_hbm [thread:$0]  %s140_s12, 16, %s296_s2, [#allocation6]  }
 0x21b   :  { %233 = dma.done.wait [#allocation6], 16  }
 0x21c   :  { %234 = vsyncadd [#allocation6], 4294967280 }
 0x21d   :  { %146 = vsyncpa [#allocation5], 1 }
 0x21e   :  { %147 = vsyncpa [#allocation8], 1 }
 0x21f   :  { %148 = vsyncpa [#allocation6], 1 }

</bundles_post_ra>
